<compile_context>
chip_gen: v6e
topology: v6e:2x2x1
jax: 0.10.0
libtpu: 0.0.40
codegen_flags: <defaults>
</compile_context>

<pallas_src>
import functools
import math

import jax
import jax.numpy as jnp
from jax.experimental import pallas as pl
from jax.experimental.pallas import tpu as pltpu

LN_EPS = 1e-5  # torch.nn.LayerNorm default


def _round_up(x, m):
    return ((x + m - 1) // m) * m


def mlp_deep_residual_kernel(
    x_ref,    # (TB, D_in)   bf16, resident per batch tile
    w0_ref,   # (D_in, H)    bf16, resident (constant block index)
    b0_ref,   # (1, H)       f32
    wb_ref,   # (1, H, H)    bf16, per-block (double-buffered across grid axis 1)
    bb_ref,   # (1, 1, H)    f32
    g_ref,    # (1, 1, H)    f32   LayerNorm gamma
    be_ref,   # (1, 1, H)    f32   LayerNorm beta
    wf_ref,   # (H, C_pad)   bf16, resident
    bf_ref,   # (1, C_pad)   f32
    o_ref,    # (TB, C_pad)  f32, resident per batch tile
    h_acc,    # (TB, H)      f32 scratch: activations carried across block steps
):
    i = pl.program_id(1)            # residual-block index ("arbitrary" axis)
    nb = pl.num_programs(1)

    # Initial projection Linear(D_in -> H), once per batch tile.
    @pl.when(i == 0)
    def _():
        h_acc[...] = (
            jnp.dot(x_ref[...], w0_ref[...], preferred_element_type=jnp.float32)
            + b0_ref[...]
        )

    # Residual block i: Linear -> LayerNorm -> ReLU, plus identity skip.
    h = h_acc[...]                                              # f32 activations
    y = (
        jnp.dot(h.astype(jnp.bfloat16), wb_ref[0],
                preferred_element_type=jnp.float32)
        + bb_ref[0]
    )
    # LayerNorm in f32 (XLU reductions + EUP rsqrt overlap with the MXU push).
    mu = jnp.mean(y, axis=-1, keepdims=True)
    var = jnp.mean(jnp.square(y - mu), axis=-1, keepdims=True)
    y = (y - mu) * jax.lax.rsqrt(var + LN_EPS)
    y = y * g_ref[0] + be_ref[0]
    h_new = jnp.maximum(y, 0.0) + h                             # ReLU + identity skip
    h_acc[...] = h_new

    # Classifier head Linear(H -> C), once per batch tile on the last block step.
    @pl.when(i == nb - 1)
    def _():
        o_ref[...] = (
            jnp.dot(h_new.astype(jnp.bfloat16), wf_ref[...],
                    preferred_element_type=jnp.float32)
            + bf_ref[...]
        ).astype(o_ref.dtype)


@functools.partial(jax.jit, static_argnames=("num_classes",))
def mlp_deep_residual_forward(x_nchw, params, num_classes):
    """x_nchw: (B, 3, H, W). Returns logits (B, num_classes) in float32."""
    B = x_nchw.shape[0]
    x_flat = x_nchw.reshape(B, -1).astype(jnp.bfloat16)   # torch.nn.Flatten order
    D_in = x_flat.shape[1]

    w0 = params["w0"].astype(jnp.bfloat16)
    b0 = params["b0"].astype(jnp.float32)
    wb = params["wb"].astype(jnp.bfloat16)
    bb = params["bb"].astype(jnp.float32)
    gamma = params["gamma"].astype(jnp.float32)
    beta = params["beta"].astype(jnp.float32)
    wf = params["wf"].astype(jnp.bfloat16)
    bf = params["bf"].astype(jnp.float32)

    H = w0.shape[1]
    NB = wb.shape[0]
    assert NB >= 1, "num_layers must be >= 2 (at least one residual block)"

    # --- batch padding / tiling: fill the MXU rows (bf16 sublane pack = 16) ---
    TB = 128 if B >= 128 else _round_up(B, 16)
    B_pad = _round_up(B, TB)
    if B_pad != B:
        x_flat = jnp.pad(x_flat, ((0, B_pad - B), (0, 0)))

    # --- lane-dense classifier head: pad output columns to a multiple of 128 ---
    C_pad = _round_up(max(num_classes, 128), 128)
    if C_pad != num_classes:
        wf = jnp.pad(wf, ((0, 0), (0, C_pad - num_classes)))
        bf = jnp.pad(bf, ((0, 0), (0, C_pad - num_classes)))

    grid = (B_pad // TB, NB)

    # Advisory cost estimate for XLA's scheduler.
    flops = 2 * B_pad * (D_in * H + NB * H * H + H * C_pad)
    bytes_accessed = (
        B_pad * D_in * 2 + D_in * H * 2 + NB * H * H * 2 + H * C_pad * 2
        + (3 * NB + 1) * H * 4 + C_pad * 4 + B_pad * C_pad * 4
    )
    cost = pl.CostEstimate(
        flops=flops, transcendentals=NB * B_pad, bytes_accessed=bytes_accessed
    )

    # Explicit VMEM budget (double-buffered inputs + scratch), capped to fit v7x.
    vmem_bytes = (
        2 * TB * D_in * 2        # x tile (bf16, double buffered)
        + 2 * D_in * H * 2       # w0 (bf16)
        + 2 * 2 * H * H * 2      # per-block weight (bf16, double buffered)
        + 2 * H * C_pad * 2      # wf (bf16)
        + 2 * TB * C_pad * 4     # output tile (f32)
        + TB * H * 4             # h accumulator scratch (f32)
        + 16 * H * 4             # biases / gamma / beta
    )
    vmem_limit = min(max(int(vmem_bytes * 1.5), 16 * 1024 * 1024),
                     48 * 1024 * 1024)

    out = pl.pallas_call(
        mlp_deep_residual_kernel,
        out_shape=jax.ShapeDtypeStruct((B_pad, C_pad), jnp.float32),
        grid_spec=pltpu.PrefetchScalarGridSpec(
            num_scalar_prefetch=0,
            grid=grid,
            in_specs=[
                pl.BlockSpec((TB, D_in), lambda b, i: (b, 0)),      # x
                pl.BlockSpec((D_in, H), lambda b, i: (0, 0)),       # w0
                pl.BlockSpec((1, H), lambda b, i: (0, 0)),          # b0
                pl.BlockSpec((1, H, H), lambda b, i: (i, 0, 0)),    # wb[i]
                pl.BlockSpec((1, 1, H), lambda b, i: (i, 0, 0)),    # bb[i]
                pl.BlockSpec((1, 1, H), lambda b, i: (i, 0, 0)),    # gamma[i]
                pl.BlockSpec((1, 1, H), lambda b, i: (i, 0, 0)),    # beta[i]
                pl.BlockSpec((H, C_pad), lambda b, i: (0, 0)),      # wf
                pl.BlockSpec((1, C_pad), lambda b, i: (0, 0)),      # bf
            ],
            out_specs=pl.BlockSpec((TB, C_pad), lambda b, i: (b, 0)),
            scratch_shapes=[pltpu.VMEM((TB, H), jnp.float32)],
        ),
        compiler_params=pltpu.CompilerParams(
            dimension_semantics=("parallel", "arbitrary"),
            vmem_limit_bytes=vmem_limit,
        ),
        cost_estimate=cost,
    )(x_flat, w0, b0, wb, bb, gamma, beta, wf, bf)

    return out[:B, :num_classes]


def init_params(key, d_in, hidden_dim, num_classes, num_layers):
    """Deterministic init mimicking torch's U(-1/sqrt(fan_in), 1/sqrt(fan_in)).

    Weights stored in bf16 (MXU-native / halves HBM traffic); biases & LN affine in f32.
    """
    nb = num_layers - 1
    keys = jax.random.split(key, 6)

    def unif(k, shape, fan_in, dtype):
        bound = 1.0 / math.sqrt(fan_in)
        return jax.random.uniform(k, shape, jnp.float32, -bound, bound).astype(dtype)

    return {
        "w0": unif(keys[0], (d_in, hidden_dim), d_in, jnp.bfloat16),
        "b0": unif(keys[1], (1, hidden_dim), d_in, jnp.float32),
        "wb": unif(keys[2], (nb, hidden_dim, hidden_dim), hidden_dim, jnp.bfloat16),
        "bb": unif(keys[3], (nb, 1, hidden_dim), hidden_dim, jnp.float32),
        "gamma": jnp.ones((nb, 1, hidden_dim), jnp.float32),
        "beta": jnp.zeros((nb, 1, hidden_dim), jnp.float32),
        "wf": unif(keys[4], (hidden_dim, num_classes), hidden_dim, jnp.bfloat16),
        "bf": unif(keys[5], (1, num_classes), hidden_dim, jnp.float32),
    }


def reference_forward(x_nchw, params):
    """Pure-JAX reference with the same mixed precision (bf16 inputs, f32 accum)."""
    x = x_nchw.reshape(x_nchw.shape[0], -1).astype(jnp.bfloat16)
    h = jnp.dot(x, params["w0"], preferred_element_type=jnp.float32) + params["b0"]
    nb = params["wb"].shape[0]
    for i in range(nb):
        y = jnp.dot(h.astype(jnp.bfloat16), params["wb"][i],
                    preferred_element_type=jnp.float32) + params["bb"][i]
        mu = jnp.mean(y, axis=-1, keepdims=True)
        var = jnp.mean(jnp.square(y - mu), axis=-1, keepdims=True)
        y = (y - mu) * jax.lax.rsqrt(var + LN_EPS)
        y = y * params["gamma"][i] + params["beta"][i]
        h = jnp.maximum(y, 0.0) + h
    return jnp.dot(h.astype(jnp.bfloat16), params["wf"],
                   preferred_element_type=jnp.float32) + params["bf"]


if __name__ == "__main__":
    # Small shapes consistent with the module: 3 x 16 x 16 images,
    # hidden_dim=128, num_layers=4 (=> 3 residual blocks), 6 classes.
    B, C_IN, H_IMG, W_IMG = 2, 3, 16, 16
    HIDDEN, NUM_CLASSES, NUM_LAYERS = 128, 6, 4
    D_IN = C_IN * H_IMG * W_IMG

    key = jax.random.PRNGKey(0)
    k_x, k_p = jax.random.split(key)
    x = jax.random.normal(k_x, (B, C_IN, H_IMG, W_IMG), jnp.float32)
    params = init_params(k_p, D_IN, HIDDEN, NUM_CLASSES, NUM_LAYERS)

    out = mlp_deep_residual_forward(x, params, NUM_CLASSES)
    out = jax.block_until_ready(out)

    ref = reference_forward(x, params)
    assert out.shape == (B, NUM_CLASSES)
    assert jnp.allclose(out, ref, atol=1e-2, rtol=1e-2), "mismatch vs JAX reference"

    print("KERNEL_OK")
</pallas_src>

<mosaic_0001>
module attributes {stable_mosaic.version = 11 : i64} {
  func.func @mlp_deep_residual_kernel(%arg0: i32, %arg1: i32, %arg2: memref<16x768xbf16, #tpu.memory_space<vmem>>, %arg3: memref<768x128xbf16, #tpu.memory_space<vmem>>, %arg4: memref<1x128xf32, #tpu.memory_space<vmem>>, %arg5: memref<1x128x128xbf16, #tpu.memory_space<vmem>>, %arg6: memref<1x1x128xf32, #tpu.memory_space<vmem>>, %arg7: memref<1x1x128xf32, #tpu.memory_space<vmem>>, %arg8: memref<1x1x128xf32, #tpu.memory_space<vmem>>, %arg9: memref<128x128xbf16, #tpu.memory_space<vmem>>, %arg10: memref<1x128xf32, #tpu.memory_space<vmem>>, %arg11: memref<16x128xf32, #tpu.memory_space<vmem>>, %arg12: memref<16x128xf32, #tpu.memory_space<vmem>>) attributes {dimension_semantics = [#tpu.dimension_semantics<parallel>, #tpu.dimension_semantics<arbitrary>], iteration_bounds = array<i64: 1, 3>, scalar_prefetch = 0 : i64, scratch_operands = 1 : i64, tpu.core_type = #tpu.core_type<tc>, window_params = [{transform_indices = @transform_0, window_bounds = array<i64: 16, 768>}, {pipeline_mode = #tpu.pipeline_mode<synchronous>, transform_indices = @transform_1, window_bounds = array<i64: 768, 128>}, {pipeline_mode = #tpu.pipeline_mode<synchronous>, transform_indices = @transform_2, window_bounds = array<i64: 1, 128>}, {transform_indices = @transform_3, window_bounds = array<i64: 1, 128, 128>}, {transform_indices = @transform_4, window_bounds = array<i64: 1, 1, 128>}, {transform_indices = @transform_5, window_bounds = array<i64: 1, 1, 128>}, {transform_indices = @transform_6, window_bounds = array<i64: 1, 1, 128>}, {pipeline_mode = #tpu.pipeline_mode<synchronous>, transform_indices = @transform_7, window_bounds = array<i64: 128, 128>}, {pipeline_mode = #tpu.pipeline_mode<synchronous>, transform_indices = @transform_8, window_bounds = array<i64: 1, 128>}, {transform_indices = @transform_9, window_bounds = array<i64: 16, 128>}]} {
    %c0_i32 = arith.constant 0 : i32
    %0 = arith.cmpi eq, %arg1, %c0_i32 : i32
    %1 = arith.extui %0 : i1 to i32
    %c0_i32_0 = arith.constant 0 : i32
    %2 = arith.cmpi ne, %1, %c0_i32_0 : i32
    scf.if %2 {
      %c0_23 = arith.constant 0 : index
      %c0_24 = arith.constant 0 : index
      %45 = vector.load %arg2[%c0_23, %c0_24] : memref<16x768xbf16, #tpu.memory_space<vmem>>, vector<16x768xbf16>
      %c0_25 = arith.constant 0 : index
      %c0_26 = arith.constant 0 : index
      %46 = vector.load %arg3[%c0_25, %c0_26] : memref<768x128xbf16, #tpu.memory_space<vmem>>, vector<768x128xbf16>
      %cst_27 = arith.constant dense<0.000000e+00> : vector<16x128xf32>
      %47 = tpu.matmul %45, %46, %cst_27 {dimension_numbers = #tpu.dot_dimension_numbers<[1], [0], [0], [1], [0, 0, 1, 1], [], []>} : vector<16x768xbf16>, vector<768x128xbf16>, vector<16x128xf32> -> vector<16x128xf32>
      %c0_28 = arith.constant 0 : index
      %c0_29 = arith.constant 0 : index
      %48 = vector.load %arg4[%c0_28, %c0_29] : memref<1x128xf32, #tpu.memory_space<vmem>>, vector<1x128xf32>
      %49 = vector.broadcast %48 : vector<1x128xf32> to vector<16x128xf32>
      %50 = arith.addf %47, %49 : vector<16x128xf32>
      %c0_30 = arith.constant 0 : index
      %c0_31 = arith.constant 0 : index
      %51 = vector.load %arg12[%c0_30, %c0_31] : memref<16x128xf32, #tpu.memory_space<vmem>>, vector<16x128xf32>
      tpu.vector_store %arg12[%c0_30, %c0_31], %50 {strides = array<i32>} : memref<16x128xf32, #tpu.memory_space<vmem>>, vector<16x128xf32>,
    } else {
    }
    %c0 = arith.constant 0 : index
    %c0_1 = arith.constant 0 : index
    %3 = vector.load %arg12[%c0, %c0_1] : memref<16x128xf32, #tpu.memory_space<vmem>>, vector<16x128xf32>
    %4 = arith.truncf %3 : vector<16x128xf32> to vector<16x128xbf16>
    %c0_2 = arith.constant 0 : index
    %c0_3 = arith.constant 0 : index
    %c0_4 = arith.constant 0 : index
    %5 = vector.load %arg5[%c0_2, %c0_3, %c0_4] : memref<1x128x128xbf16, #tpu.memory_space<vmem>>, vector<1x128x128xbf16>
    %6 = vector.shape_cast %5 : vector<1x128x128xbf16> to vector<128x128xbf16>
    %cst = arith.constant dense<0.000000e+00> : vector<16x128xf32>
    %7 = tpu.matmul %4, %6, %cst {dimension_numbers = #tpu.dot_dimension_numbers<[1], [0], [0], [1], [0, 0, 1, 1], [], []>} : vector<16x128xbf16>, vector<128x128xbf16>, vector<16x128xf32> -> vector<16x128xf32>
    %c0_5 = arith.constant 0 : index
    %c0_6 = arith.constant 0 : index
    %c0_7 = arith.constant 0 : index
    %8 = vector.load %arg6[%c0_5, %c0_6, %c0_7] : memref<1x1x128xf32, #tpu.memory_space<vmem>>, vector<1x1x128xf32>
    %9 = vector.shape_cast %8 : vector<1x1x128xf32> to vector<1x128xf32>
    %10 = vector.broadcast %9 : vector<1x128xf32> to vector<16x128xf32>
    %11 = arith.addf %7, %10 : vector<16x128xf32>
    %cst_8 = arith.constant dense<0.000000e+00> : vector<16xf32>
    %12 = vector.multi_reduction <add>, %11, %cst_8 [1] : vector<16x128xf32> to vector<16xf32>
    %13 = vector.shape_cast %12 : vector<16xf32> to vector<16x1xf32>
    %cst_9 = arith.constant 1.280000e+02 : f32
    %14 = vector.broadcast %cst_9 : f32 to vector<16x1xf32>
    %15 = arith.divf %13, %14 : vector<16x1xf32>
    %16 = vector.broadcast %15 : vector<16x1xf32> to vector<16x128xf32>
    %17 = arith.subf %11, %16 : vector<16x128xf32>
    %18 = arith.mulf %17, %17 : vector<16x128xf32>
    %cst_10 = arith.constant dense<0.000000e+00> : vector<16xf32>
    %19 = vector.multi_reduction <add>, %18, %cst_10 [1] : vector<16x128xf32> to vector<16xf32>
    %20 = vector.shape_cast %19 : vector<16xf32> to vector<16x1xf32>
    %cst_11 = arith.constant 1.280000e+02 : f32
    %21 = vector.broadcast %cst_11 : f32 to vector<16x1xf32>
    %22 = arith.divf %20, %21 : vector<16x1xf32>
    %23 = vector.broadcast %15 : vector<16x1xf32> to vector<16x128xf32>
    %24 = arith.subf %11, %23 : vector<16x128xf32>
    %cst_12 = arith.constant 9.99999974E-6 : f32
    %25 = vector.broadcast %cst_12 : f32 to vector<16x1xf32>
    %26 = arith.addf %22, %25 : vector<16x1xf32>
    %27 = math.rsqrt %26 : vector<16x1xf32>
    %28 = vector.broadcast %27 : vector<16x1xf32> to vector<16x128xf32>
    %29 = arith.mulf %24, %28 : vector<16x128xf32>
    %c0_13 = arith.constant 0 : index
    %c0_14 = arith.constant 0 : index
    %c0_15 = arith.constant 0 : index
    %30 = vector.load %arg7[%c0_13, %c0_14, %c0_15] : memref<1x1x128xf32, #tpu.memory_space<vmem>>, vector<1x1x128xf32>
    %31 = vector.shape_cast %30 : vector<1x1x128xf32> to vector<1x128xf32>
    %32 = vector.broadcast %31 : vector<1x128xf32> to vector<16x128xf32>
    %33 = arith.mulf %29, %32 : vector<16x128xf32>
    %c0_16 = arith.constant 0 : index
    %c0_17 = arith.constant 0 : index
    %c0_18 = arith.constant 0 : index
    %34 = vector.load %arg8[%c0_16, %c0_17, %c0_18] : memref<1x1x128xf32, #tpu.memory_space<vmem>>, vector<1x1x128xf32>
    %35 = vector.shape_cast %34 : vector<1x1x128xf32> to vector<1x128xf32>
    %36 = vector.broadcast %35 : vector<1x128xf32> to vector<16x128xf32>
    %37 = arith.addf %33, %36 : vector<16x128xf32>
    %cst_19 = arith.constant 0.000000e+00 : f32
    %38 = vector.broadcast %cst_19 : f32 to vector<16x128xf32>
    %39 = arith.maximumf %37, %38 : vector<16x128xf32>
    %40 = arith.addf %39, %3 : vector<16x128xf32>
    %c0_20 = arith.constant 0 : index
    %c0_21 = arith.constant 0 : index
    %41 = vector.load %arg12[%c0_20, %c0_21] : memref<16x128xf32, #tpu.memory_space<vmem>>, vector<16x128xf32>
    tpu.vector_store %arg12[%c0_20, %c0_21], %40 {strides = array<i32>} : memref<16x128xf32, #tpu.memory_space<vmem>>, vector<16x128xf32>,
    %c2_i32 = arith.constant 2 : i32
    %42 = arith.cmpi eq, %arg1, %c2_i32 : i32
    %43 = arith.extui %42 : i1 to i32
    %c0_i32_22 = arith.constant 0 : i32
    %44 = arith.cmpi ne, %43, %c0_i32_22 : i32
    scf.if %44 {
      %45 = arith.truncf %40 : vector<16x128xf32> to vector<16x128xbf16>
      %c0_23 = arith.constant 0 : index
      %c0_24 = arith.constant 0 : index
      %46 = vector.load %arg9[%c0_23, %c0_24] : memref<128x128xbf16, #tpu.memory_space<vmem>>, vector<128x128xbf16>
      %cst_25 = arith.constant dense<0.000000e+00> : vector<16x128xf32>
      %47 = tpu.matmul %45, %46, %cst_25 {dimension_numbers = #tpu.dot_dimension_numbers<[1], [0], [0], [1], [0, 0, 1, 1], [], []>} : vector<16x128xbf16>, vector<128x128xbf16>, vector<16x128xf32> -> vector<16x128xf32>
      %c0_26 = arith.constant 0 : index
      %c0_27 = arith.constant 0 : index
      %48 = vector.load %arg10[%c0_26, %c0_27] : memref<1x128xf32, #tpu.memory_space<vmem>>, vector<1x128xf32>
      %49 = vector.broadcast %48 : vector<1x128xf32> to vector<16x128xf32>
      %50 = arith.addf %47, %49 : vector<16x128xf32>
      %c0_28 = arith.constant 0 : index
      %c0_29 = arith.constant 0 : index
      %51 = vector.load %arg11[%c0_28, %c0_29] : memref<16x128xf32, #tpu.memory_space<vmem>>, vector<16x128xf32>
      tpu.vector_store %arg11[%c0_28, %c0_29], %50 {strides = array<i32>} : memref<16x128xf32, #tpu.memory_space<vmem>>, vector<16x128xf32>,
    } else {
    }
    return
  }
  func.func @transform_0(%arg0: i32, %arg1: i32) -> (i32, i32) {
    %c0_i32 = arith.constant 0 : i32
    %c0_i32_0 = arith.constant 0 : i32
    return %arg0, %c0_i32 : i32, i32
  }
  func.func @transform_1(%arg0: i32, %arg1: i32) -> (i32, i32) {
    %c0_i32 = arith.constant 0 : i32
    %c0_i32_0 = arith.constant 0 : i32
    %c0_i32_1 = arith.constant 0 : i32
    return %c0_i32, %c0_i32_0 : i32, i32
  }
  func.func @transform_2(%arg0: i32, %arg1: i32) -> (i32, i32) {
    %c0_i32 = arith.constant 0 : i32
    %c0_i32_0 = arith.constant 0 : i32
    %c0_i32_1 = arith.constant 0 : i32
    return %c0_i32, %c0_i32_0 : i32, i32
  }
  func.func @transform_3(%arg0: i32, %arg1: i32) -> (i32, i32, i32) {
    %c0_i32 = arith.constant 0 : i32
    %c0_i32_0 = arith.constant 0 : i32
    %c0_i32_1 = arith.constant 0 : i32
    return %arg1, %c0_i32, %c0_i32_0 : i32, i32, i32
  }
  func.func @transform_4(%arg0: i32, %arg1: i32) -> (i32, i32, i32) {
    %c0_i32 = arith.constant 0 : i32
    %c0_i32_0 = arith.constant 0 : i32
    %c0_i32_1 = arith.constant 0 : i32
    return %arg1, %c0_i32, %c0_i32_0 : i32, i32, i32
  }
  func.func @transform_5(%arg0: i32, %arg1: i32) -> (i32, i32, i32) {
    %c0_i32 = arith.constant 0 : i32
    %c0_i32_0 = arith.constant 0 : i32
    %c0_i32_1 = arith.constant 0 : i32
    return %arg1, %c0_i32, %c0_i32_0 : i32, i32, i32
  }
  func.func @transform_6(%arg0: i32, %arg1: i32) -> (i32, i32, i32) {
    %c0_i32 = arith.constant 0 : i32
    %c0_i32_0 = arith.constant 0 : i32
    %c0_i32_1 = arith.constant 0 : i32
    return %arg1, %c0_i32, %c0_i32_0 : i32, i32, i32
  }
  func.func @transform_7(%arg0: i32, %arg1: i32) -> (i32, i32) {
    %c0_i32 = arith.constant 0 : i32
    %c0_i32_0 = arith.constant 0 : i32
    %c0_i32_1 = arith.constant 0 : i32
    return %c0_i32, %c0_i32_0 : i32, i32
  }
  func.func @transform_8(%arg0: i32, %arg1: i32) -> (i32, i32) {
    %c0_i32 = arith.constant 0 : i32
    %c0_i32_0 = arith.constant 0 : i32
    %c0_i32_1 = arith.constant 0 : i32
    return %c0_i32, %c0_i32_0 : i32, i32
  }
  func.func @transform_9(%arg0: i32, %arg1: i32) -> (i32, i32) {
    %c0_i32 = arith.constant 0 : i32
    %c0_i32_0 = arith.constant 0 : i32
    return %arg0, %c0_i32 : i32, i32
  }
}

</mosaic_0001>

<bundles_post_ra>
// kernel: mlp_deep_residual_forward.1
= control target key start
LH: loop header
LB: loop body
LE: loop exit
PB: predicated region body
PF: predicated region fallthrough
CT: control target
= control target key end

     0   :  { %14 = vsyncpa [#allocation4], 0  ;;  %s2208_s0 = inlined_call_operand.vmem [shape: bf16[16,768], index: 0, kind: input, shape index: {}]   ;;  %s2209_s1 = inlined_call_operand.vmem [shape: bf16[768,128], index: 1, kind: input, shape index: {}]   ;;  %s2210_s2 = inlined_call_operand.vmem [shape: f32[1,128], index: 2, kind: input, shape index: {}]   ;;  %s2211_s3 = inlined_call_operand.hbm [shape: bf16[3,128,128], index: 3, kind: input, shape index: {}]   ;;  %s2212_s4 = inlined_call_operand.vmem [shape: f32[3,1,128], index: 4, kind: input, shape index: {}]   ;;  %s2213_s5 = inlined_call_operand.vmem [shape: f32[3,1,128], index: 5, kind: input, shape index: {}]   ;;  %s2214_s6 = inlined_call_operand.vmem [shape: f32[3,1,128], index: 6, kind: input, shape index: {}]   ;;  %s2215_s7 = inlined_call_operand.vmem [shape: bf16[128,128], index: 7, kind: input, shape index: {}]   ;;  %s2216_s8 = inlined_call_operand.vmem [shape: f32[1,128], index: 8, kind: input, shape index: {}]   ;;  %s2217_s9 = inlined_call_operand.vmem [shape: f32[16,128], index: 9, kind: output, shape index: {}]  }
   0x1   :  { %16 = vsyncpa [#allocation4 + $0x1], 0  ;;  %s1876_s30 = smov 0   ;;  %s1878_s10 = smov 0  }
   0x2   :  { %s1880_s11 = smov 0   ;;  %s1882_s12 = smov 0  }
   0x3   :  { %s1884_s13 = smov 0   ;;  %s1886_s14 = smov 0  }
   0x4 LB: > { %s1386_s15 = sadd.s32 4294967295, %s1817_s14   ;;  %s31_s16 = sadd.s32 1, %s1813_s13  ;;  %s1817_s14 = sphi %s1886_s14, %s22_s14   ;;  %s1813_s13 = sphi %s1884_s13, %s2228_s13   ;;  %s1809_s12 = sphi %s1882_s12, %s2227_s12   ;;  %s1805_s11 = sphi %s1880_s11, %s2226_s11   ;;  %s1801_s10 = sphi %s1878_s10, %s2225_s10   ;;  %s1797_s30 = sphi %s1876_s30, %s2224_s30  }
   0x5   : > { %p32_p0 = scmp.ge.s32.totalorder %s31_s16, 3  ;;  %s109_s17 = sadd.s32 1, %s1805_s11 }
   0x6   : > { %p116_p1 = scmp.ne.s32.totalorder %s1805_s11, %s1801_s10  ;;  %p117_p2 = scmp.eq.s32.totalorder %s1817_s14, 0 }
   0x7   : > { %s2230_s16 = smov (%p32_p0, %s31_s16), 0  ;;  %p122_p4 = scmp.ne.s32.totalorder %s1801_s10, %s1797_s30 }
   0x8   : > { %2219 = sst [smem:[#allocation6_spill]] %s2230_s16  ;;  %p1912_p3 = por %p117_p2, %p116_p1 }
   0x9   : > { %s106_s19 = ssub.s32 %s1813_s13, %s2230_s16  ;;  %p123_p5 = scmp.eq.s32.totalorder %s1386_s15, 0 }
   0xa   : > { %p107_p6 = scmp.eq.s32.totalorder %s106_s19, 0  ;;  %p1607_p8 = scmp.lt.s32.totalorder %s1817_s14, 3 }
   0xb   : > { %p1919_p7 = por %p123_p5, %p122_p4  ;;  %s314_s22 = sand.u32 1, %s1805_s11  }
   0xc   : > { %s1925_s21 = scalar_select %p107_p6, %s1805_s11, %s109_s17  }
   0xd   : > { %s1476_s23 = sshll.u32 %s1813_s13, 10  ;;  %s1390_s24 = sshll.u32 %s314_s22, 6 }
   0xe   : > { %s324_s27 = scalar_lea.hbm %s2211_s3, %s1476_s23  ;;  %s318_s28 = scalar_lea.vmem [#allocation3], %s1390_s24 }
   0xf   : > { %s325_s29 = sshll.u32 %s318_s28, 4  ;;  %p1934_p9 = pnand %p1607_p8, %p1912_p3  ;;  %s326_s29 = int_to_ptr.vmem [resolvable:$true] %s325_s29 }
  0x10   : > { %s315_s15 = scalar_lea.sflag [#allocation4], %s314_s22  ;;  %s1752_s17 = scalar_lea.vmem %s326_s29, 1024 }
  0x11   : > { %p1741_p10 = pneg %p1934_p9  ;;  %p1753_p11 = scmp.ne.s32.totalorder %s326_s29, %s1752_s17 }
  0x12   : > { %s1819_s19 = smov [#allocation3]  }
  0x13   : > { %p1755_p12 = pnand %p1753_p11, %p1741_p10  ;;  %s1757_s16 = sshll.u32 %s1819_s19, 4  ;;  %s1758_s16 = int_to_ptr.vmem [resolvable:$false] %s1757_s16 }
  0x14   : > { %s1759_s23 = scalar_lea.vmem %s1758_s16, 2048  ;;  %p1760_p0 = scmp.lt.s32.totalorder %s326_s29, %s1758_s16 }
  0x15   : > { %p1756_p13 = pneg %p1755_p12  ;;  %p1761_p1 = scmp.lt.s32.totalorder %s1759_s23, %s1752_s17 }
  0x17   : > { %p1762_p2 = por %p1761_p1, %p1760_p0 }
  0x19   : > { %p1763_p3 = pnand %p1762_p2, %p1756_p13 }
  0x1b   : > { %1766 = shalt.err (!%p1763_p3)
}
  0x1c   : > { %s1820_s18 = smov 64   ;;  %s1821_s22 = smov 4  }
  0x1d   : > { %1606 = dma.hbm_to_vmem [thread:$0]  (!%p1934_p9), %s324_s27, 1024, %s326_s29, %s315_s15, %s1820_s18, %s1820_s18, %s1821_s22  }
  0x1e   : > { %p1393_p4 = scmp.ge.s32.totalorder %s1817_s14, 1  ;;  %p351_p5 = scmp.lt.s32.totalorder %s1817_s14, 4 }
  0x20   : > { %p352_p6 = pnand %p1393_p4, %p351_p5 }
  0x21   : > { %s357_s24 = sand.u32 (!%p352_p6), 1, %s1801_s10  }
  0x22   : > { %355 = sbr.rel (%p352_p6) target bundleno = 1093 (0x445), region = 56  ;;  %s1394_s25 = sshll.u32 (!%p352_p6), %s357_s24, 6 }
  0x23   : > { %s358_s16 = scalar_lea.sflag (!%p352_p6), [#allocation4], %s357_s24  ;;  %s1945_s26 = scalar_lea.vmem (!%p352_p6), [#allocation3], %s1394_s25 }
  0x27   : > { %1792 = dma.done.wait (%p1919_p7), %s358_s16, 1024  }
  0x28   : > { %1794 = vsyncadd (%p1919_p7), %s358_s16, 4294966272  ;;  %p418_p8 = scmp.lt.s32.totalorder %s1809_s12, 2  ;;  %p1395_p7 = scmp.ne.s32.totalorder %s1809_s12, 0 }
  0x2a   : > { %s1953_s27 = scalar_select %p418_p8, %s1809_s12, 2 }
  0x2b   : > { %437 = sbr.rel (%p1395_p7) target bundleno = 317 (0x13d), region = 64 }
  0x2c   : > { %s420_s30 = scalar_lea.vmem %s2212_s4, %s1953_s27  ;;  %s423_s19 = scalar_lea.vmem %s2213_s5, %s1953_s27 }
  0x2d   : > { %s426_s20 = scalar_lea.vmem %s2214_s6, %s1953_s27 }
  0x30   : > { %v1662_v0 = vld [vmem:[%s2209_s1 + $0x78] sm:$0xff]   ;;  %v1666_v4 = vld [vmem:[%s2209_s1 + $0x70] sm:$0xff]   ;;  %v1670_v8 = vld [vmem:[%s2209_s1 + $0x68] sm:$0xff]  }
  0x31   : > { %v1663_v1 = vld [vmem:[%s2209_s1 + $0x38] sm:$0xff]   ;;  %1477 = vmatprep.subr.bf16.mxu0 %v1662_v0  ;;  %v1667_v5 = vld [vmem:[%s2209_s1 + $0x30] sm:$0xff]   ;;  %v1671_v9 = vld [vmem:[%s2209_s1 + $0x28] sm:$0xff]  }
  0x32   : > { %v1664_v2 = vld [vmem:[%s2209_s1 + $0xf8] sm:$0xff]   ;;  %1478 = vmatpush3.bf16.msra.mxu0 %v1663_v1  ;;  %v1668_v6 = vld [vmem:[%s2209_s1 + $0xf0] sm:$0xff]   ;;  %v1672_v10 = vld [vmem:[%s2209_s1 + $0xe8] sm:$0xff]  }
  0x33   : > { %v1665_v3 = vld [vmem:[%s2209_s1 + $0xb8] sm:$0xff]   ;;  %1499 = vmatprep.subr.bf16.mxu1 %v1664_v2  ;;  %1479 = vmatprep.subr.bf16.mxu0 %v1666_v4  ;;  %v1669_v7 = vld [vmem:[%s2209_s1 + $0xb0] sm:$0xff]   ;;  %v1673_v11 = vld [vmem:[%s2209_s1 + $0xa8] sm:$0xff]  }
  0x34   : > { %1500 = vmatpush3.bf16.msra.mxu1 %v1665_v3  ;;  %v1674_v12 = vld [vmem:[%s2209_s1 + $0x60] sm:$0xff]   ;;  %v1678_v16 = vld [vmem:[%s2209_s1 + $0x58] sm:$0xff]   ;;  %v1682_v20 = vld [vmem:[%s2209_s1 + $0x50] sm:$0xff]  }
  0x35   : > { %1501 = vmatprep.subr.bf16.mxu1 %v1668_v6  ;;  %v1675_v13 = vld [vmem:[%s2209_s1 + $0x20] sm:$0xff]   ;;  %v1679_v17 = vld [vmem:[%s2209_s1 + $0x18] sm:$0xff]   ;;  %v1683_v21 = vld [vmem:[%s2209_s1 + $0x10] sm:$0xff]  }
  0x36   : > { %1480 = vmatpush3.bf16.msra.mxu0 %v1667_v5  ;;  %v1676_v14 = vld [vmem:[%s2209_s1 + $0xe0] sm:$0xff]   ;;  %v1680_v18 = vld [vmem:[%s2209_s1 + $0xd8] sm:$0xff]   ;;  %v1684_v22 = vld [vmem:[%s2209_s1 + $0xd0] sm:$0xff]  }
  0x37   : > { %1481 = vmatprep.subr.bf16.mxu0 %v1670_v8  ;;  %v1677_v15 = vld [vmem:[%s2209_s1 + $0xa0] sm:$0xff]   ;;  %v1681_v19 = vld [vmem:[%s2209_s1 + $0x98] sm:$0xff]   ;;  %v1685_v23 = vld [vmem:[%s2209_s1 + $0x90] sm:$0xff]  }
  0x38   : > { %1502 = vmatpush3.bf16.msra.mxu1 %v1669_v7  ;;  %v1686_v24 = vld [vmem:[%s2209_s1 + $0x48] sm:$0xff]   ;;  %v1690_v28 = vld [vmem:[%s2209_s1 + $0x40] sm:$0xff]   ;;  %v1697_v34 = vld [vmem:[%s2209_s1 + $0x178] sm:$0xff]  }
  0x39   : > { %1503 = vmatprep.subr.bf16.mxu1 %v1672_v10  ;;  %v1687_v25 = vld [vmem:[%s2209_s1 + $0x8] sm:$0xff]   ;;  %v1691_v29 = vld [vmem:[%s2209_s1] sm:$0xff]   ;;  %v1701_v37 = vld [vmem:[%s2209_s1 + $0x138] sm:$0xff]  }
  0x3a   : > { %1482 = vmatpush3.bf16.msra.mxu0 %v1671_v9  ;;  %v1688_v26 = vld [vmem:[%s2209_s1 + $0xc8] sm:$0xff]   ;;  %v1692_v30 = vld [vmem:[%s2209_s1 + $0xc0] sm:$0xff]   ;;  %v1702_v38 = vld [vmem:[%s2209_s1 + $0x170] sm:$0xff]  }
  0x3b   : > { %1483 = vmatprep.subr.bf16.mxu0 %v1674_v12  ;;  %v1689_v27 = vld [vmem:[%s2209_s1 + $0x88] sm:$0xff]   ;;  %v1693_v31 = vld [vmem:[%s2208_s0] ss:$24 sps:$4 sm:$0xff]   ;;  %v1695_v32 = vld [vmem:[%s2208_s0 + $0x4] ss:$24 sps:$4 sm:$0xff]  }
  0x3c   : > { %1504 = vmatpush3.bf16.msra.mxu1 %v1673_v11  ;;  %v1696_v33 = vld [vmem:[%s2209_s1 + $0x80] sm:$0xff]   ;;  %897 = vmatprep.mubr.bf16.mxu0 %v1695_v32  ;;  %v1703_v39 = vld [vmem:[%s2209_s1 + $0x130] sm:$0xff]   ;;  %v1704_v40 = vld [vmem:[%s2209_s1 + $0x168] sm:$0xff]  }
  0x3d   : > { %1505 = vmatprep.subr.bf16.mxu1 %v1676_v14  ;;  %v1698_v35 = vld [vmem:[%s2208_s0 + $0x8] ss:$24 sps:$4 sm:$0xff]   ;;  %v1700_v36 = vld [vmem:[%s2208_s0 + $0xc] ss:$24 sps:$4 sm:$0xff]   ;;  %v1708_v44 = vld [vmem:[%s2209_s1 + $0x158] sm:$0xff]  }
  0x3e   : > { %1484 = vmatpush3.bf16.msra.mxu0 %v1675_v13  ;;  %938 = vmatprep.mubr.bf16.mxu1 %v1700_v36  ;;  %v1705_v41 = vld [vmem:[%s2209_s1 + $0x128] sm:$0xff]   ;;  %v1706_v42 = vld [vmem:[%s2209_s1 + $0x160] sm:$0xff]   ;;  %v1709_v45 = vld [vmem:[%s2209_s1 + $0x118] sm:$0xff]  }
  0x3f   : > { %1485 = vmatprep.subr.bf16.mxu0 %v1678_v16  ;;  %v1707_v43 = vld [vmem:[%s2209_s1 + $0x120] sm:$0xff]   ;;  %v1710_v46 = vld [vmem:[%s2209_s1 + $0x150] sm:$0xff]   ;;  %v1712_v49 = vld [vmem:[%s2209_s1 + $0x148] sm:$0xff]  }
  0x40   : > { %1506 = vmatpush3.bf16.msra.mxu1 %v1677_v15  ;;  %v1718_v47 = vld [vmem:[%s2208_s0 + $0x14] ss:$24 sps:$4 sm:$0xff]   ;;  %v1714_v51 = vld [vmem:[%s2209_s1 + $0x140] sm:$0xff]   ;;  %v1716_v53 = vld [vmem:[%s2208_s0 + $0x10] ss:$24 sps:$4 sm:$0xff]  }
  0x41   : > { %1507 = vmatprep.subr.bf16.mxu1 %v1680_v18  ;;  %v1711_v48 = vld [vmem:[%s2209_s1 + $0x110] sm:$0xff]   ;;  %v1713_v50 = vld [vmem:[%s2209_s1 + $0x108] sm:$0xff]   ;;  %v1715_v52 = vld [vmem:[%s2209_s1 + $0x100] sm:$0xff]  }
  0x42   : > { %1486 = vmatpush3.bf16.msra.mxu0 %v1679_v17  ;;  %v1396_v60 = vld [vmem:[%s2210_s2] ss:$0 sm:$0xff] }
  0x43   : > { %1487 = vmatprep.subr.bf16.mxu0 %v1682_v20 }
  0x44   : > { %1508 = vmatpush3.bf16.msra.mxu1 %v1681_v19 }
  0x45   : > { %1509 = vmatprep.subr.bf16.mxu1 %v1684_v22 }
  0x46   : > { %1488 = vmatpush3.bf16.msra.mxu0 %v1683_v21 }
  0x47   : > { %1489 = vmatprep.subr.bf16.mxu0 %v1686_v24 }
  0x48   : > { %1510 = vmatpush3.bf16.msra.mxu1 %v1685_v23 }
  0x49   : > { %1511 = vmatprep.subr.bf16.mxu1 %v1688_v26 }
  0x4a   : > { %1490 = vmatpush3.bf16.msra.mxu0 %v1687_v25 }
  0x4b   : > { %1491 = vmatprep.subr.bf16.mxu0 %v1690_v28 }
  0x4c   : > { %1512 = vmatpush3.bf16.msra.mxu1 %v1689_v27 }
  0x4d   : > { %1513 = vmatprep.subr.bf16.mxu1 %v1692_v30 }
  0x4e   : > { %1492 = vmatpush3.bf16.msra.mxu0 %v1691_v29 }
  0x4f   : > { %1521 = vmatprep.subr.bf16.mxu0 %v1697_v34 }
  0x50   : > { %1514 = vmatpush3.bf16.msra.mxu1 %v1696_v33 }
  0x51   : > { %898 = vmatmul.mubr.bf16.vlgmr.msra.gmra.mxu0 %v1693_v31 }
  0x52   : > { %1522 = vmatpush3.bf16.msra.mxu0 %v1701_v37  ;;  %979 = vmatprep.mubr.bf16.mxu0 %v1718_v47 }
  0x53   : > { %939 = vmatmul.mubr.bf16.vlgmr.msra.gmra.mxu1 %v1698_v35  ;;  %1523 = vmatprep.subr.bf16.mxu0 %v1702_v38 }
  0x56   : > { %1524 = vmatpush3.bf16.msra.mxu0 %v1703_v39 }
  0x57   : > { %1525 = vmatprep.subr.bf16.mxu0 %v1704_v40 }
  0x5a   : > { %1526 = vmatpush3.bf16.msra.mxu0 %v1705_v41 }
  0x5b   : > { %1527 = vmatprep.subr.bf16.mxu0 %v1706_v42 }
  0x5e   : > { %1528 = vmatpush3.bf16.msra.mxu0 %v1707_v43 }
  0x5f   : > { %1529 = vmatprep.subr.bf16.mxu0 %v1708_v44 }
  0x62   : > { %1530 = vmatpush3.bf16.msra.mxu0 %v1709_v45 }
  0x63   : > { %1531 = vmatprep.subr.bf16.mxu0 %v1710_v46 }
  0x66   : > { %1532 = vmatpush3.bf16.msra.mxu0 %v1711_v48 }
  0x67   : > { %1533 = vmatprep.subr.bf16.mxu0 %v1712_v49 }
  0x6a   : > { %1534 = vmatpush3.bf16.msra.mxu0 %v1713_v50 }
  0x6b   : > { %1535 = vmatprep.subr.bf16.mxu0 %v1714_v51 }
  0x6e   : > { %1536 = vmatpush3.bf16.msra.mxu0 %v1715_v52 }
  0x71   : > { %980 = vmatmul.mubr.bf16.vlgmr.msra.gmra.mxu0 %v1716_v53 }
 0x111   : > { %v1493_v54 = vpop.f32.mrf.mxu0 }
 0x113   : > { %v1494_v55 = vpop.f32.mrf.mxu0  ;;  %v1515_v56 = vpop.f32.mrf.mxu1 }
 0x114   : > { %v1495_v59 = vadd.f32 %v1494_v55, %v1493_v54 }
 0x115   : > { %v1496_v57 = vpop.f32.mrf.mxu0  ;;  %v1516_v58 = vpop.f32.mrf.mxu1 }
 0x116   : > { %v900_v63 = vadd.f32 %v1495_v59, %v1396_v60  ;;  %v1517_v0 = vadd.f32 %v1516_v58, %v1515_v56 }
 0x117   : > { %v1497_v61 = vpop.f32.mrf.mxu0  ;;  %v1518_v62 = vpop.f32.mrf.mxu1 }
 0x118   : > { %v1498_v1 = vadd.f32 %v1497_v61, %v1496_v57  ;;  %v941_v5 = vadd.f32 %v1517_v0, %v900_v63 }
 0x119   : > { %v1519_v2 = vpop.f32.mrf.mxu1 }
 0x11a   : > { %v903_v6 = vadd.f32 %v1498_v1, %v1396_v60  ;;  %v1520_v7 = vadd.f32 %v1519_v2, %v1518_v62 }
 0x11c   : > { %v944_v12 = vadd.f32 %v1520_v7, %v903_v6 }
 0x131   : > { %v1537_v3 = vpop.f32.mrf.mxu0 }
 0x133   : > { %v1538_v4 = vpop.f32.mrf.mxu0 }
 0x134   : > { %v1539_v8 = vadd.f32 %v1538_v4, %v1537_v3 }
 0x135   : > { %v1540_v9 = vpop.f32.mrf.mxu0 }
 0x136   : > { %v982_v10 = vadd.f32 %v1539_v8, %v941_v5 }
 0x137   : > { %v1541_v11 = vpop.f32.mrf.mxu0 }
 0x138   : > { %988 = vst [vmem:[#allocation2] sm:$0xff] %v982_v10  ;;  %v1542_v13 = vadd.f32 %v1541_v11, %v1540_v9 }
 0x13a   : > { %v985_v14 = vadd.f32 %v1542_v13, %v944_v12 }
 0x13c   : > { %989 = vst [vmem:[#allocation2 + $0x8] sm:$0xff] %v985_v14 }
 0x13d PF: > { %v1719_v15 = vld [vmem:[%s1945_s26 + $0x38] sm:$0xff]   ;;  %v1822_v16 = vmov 0.0   ;;  %v1720_v17 = vld [vmem:[%s1945_s26 + $0x30] sm:$0xff]   ;;  %vm1823_vm0 = vmmov 0   ;;  %v1721_v18 = vld [vmem:[%s1945_s26 + $0x28] sm:$0xff]   ;;  %p1462_p9 = scmp.ne.s32.totalorder %s1809_s12, 2 }
 0x13e   : > { %1561 = vmatprep.subr.bf16.mxu0 %v1822_v16  ;;  %1577 = vmatprep.mubr.msk.bf16.mxu0 %vm1823_vm0, %v1822_v16  ;;  %v1722_v19 = vld [vmem:[%s1945_s26 + $0x20] sm:$0xff]   ;;  %v1723_v20 = vld [vmem:[%s1945_s26 + $0x18] sm:$0xff]   ;;  %v1724_v21 = vld [vmem:[%s1945_s26 + $0x10] sm:$0xff]  }
 0x13f   : > { %1562 = vmatpush3.bf16.msra.mxu0 %v1719_v15  ;;  %v1725_v22 = vld [vmem:[%s1945_s26 + $0x8] sm:$0xff]   ;;  %v1726_v23 = vld [vmem:[%s1945_s26] sm:$0xff]   ;;  %v990_v24 = vld [vmem:[#allocation2] sm:$0xff] }
 0x140   : > { %1563 = vmatprep.subr.bf16.mxu0 %v1822_v16  ;;  %v1451_v27 = vld [vmem:[%s420_s30] ss:$0 sm:$0xff] }
 0x141   : > { %v1460_v49 = vld [vmem:[%s423_s19] ss:$0 sm:$0xff] }
 0x142   : > { %v1461_v51 = vld [vmem:[%s426_s20] ss:$0 sm:$0xff] }
 0x143   : > { %1564 = vmatpush3.bf16.msra.mxu0 %v1720_v17  ;;  %v991_v25 = vld [vmem:[#allocation2 + $0x8] sm:$0xff] }
 0x144   : > { %1565 = vmatprep.subr.bf16.mxu0 %v1822_v16  ;;  %v992_v26 = vpack.c.bf16 %v991_v25, %v990_v24 }
 0x147   : > { %1566 = vmatpush3.bf16.msra.mxu0 %v1721_v18 }
 0x148   : > { %1567 = vmatprep.subr.bf16.mxu0 %v1822_v16 }
 0x14b   : > { %1568 = vmatpush3.bf16.msra.mxu0 %v1722_v19 }
 0x14c   : > { %1569 = vmatprep.subr.bf16.mxu0 %v1822_v16 }
 0x14f   : > { %1570 = vmatpush3.bf16.msra.mxu0 %v1723_v20 }
 0x150   : > { %1571 = vmatprep.subr.bf16.mxu0 %v1822_v16 }
 0x153   : > { %1572 = vmatpush3.bf16.msra.mxu0 %v1724_v21 }
 0x154   : > { %1573 = vmatprep.subr.bf16.mxu0 %v1822_v16 }
 0x157   : > { %1574 = vmatpush3.bf16.msra.mxu0 %v1725_v22 }
 0x158   : > { %1575 = vmatprep.subr.bf16.mxu0 %v1822_v16 }
 0x15b   : > { %1576 = vmatpush3.bf16.msra.mxu0 %v1726_v23 }
 0x15e   : > { %1578 = vmatmul.mubr.bf16.vlgmr.msra.gmra.mxu0 %v992_v26 }
 0x21e   : > { %v1098_v28 = vpop.f32.mrf.mxu0 }
 0x21f   : > { %v1099_v29 = vadd.f32 %v1451_v27, %v1098_v28 }
 0x220   : > { %v1579_v30 = vpop.f32.mrf.mxu0 }
 0x221   : > { %1105 = vadd.xlane.f32.xlu0 %v1099_v29 }
 0x222   : > { %v1101_v31 = vpop.f32.mrf.mxu0 }
 0x223   : > { %v1102_v32 = vadd.f32 %v1451_v27, %v1101_v31 }
 0x224   : > { %v1580_v33 = vpop.f32.mrf.mxu0 }
 0x225   : > { %1107 = vadd.xlane.f32.xlu0 %v1102_v32 }
 0x2aa   : > { %v1106_v34 = vpop.xlane.xlu0 %1105 }
 0x2ab   : > { %v1110_v35 = vmul.f32 0.0078125, %v1106_v34 }
 0x2ad   : > { %v1112_v36 = vsub.f32 %v1099_v29, %v1110_v35 }
 0x2ae   : > { %v1108_v37 = vpop.xlane.xlu0 %1107 }
 0x2af   : > { %v1111_v38 = vmul.f32 0.0078125, %v1108_v37  ;;  %v1114_v39 = vmul.f32 %v1112_v36, %v1112_v36 }
 0x2b1   : > { %v1113_v40 = vsub.f32 %v1102_v32, %v1111_v38  ;;  %1116 = vadd.xlane.f32.xlu1 %v1114_v39 }
 0x2b3   : > { %v1115_v41 = vmul.f32 %v1113_v40, %v1113_v40 }
 0x2b5   : > { %1118 = vadd.xlane.f32.xlu1 %v1115_v41 }
 0x33a   : > { %v1117_v42 = vpop.xlane.xlu1 %1116 }
 0x33b   : > { %v1120_v43 = vmul.f32 0.0078125, %v1117_v42 }
 0x33d   : > { %v1122_v44 = vadd.f32 1e-05, %v1120_v43 }
 0x33e   : > { %v1119_v45 = vpop.xlane.xlu1 %1118 }
 0x33f   : > { %1727 = vrsqrt.f32 %v1122_v44  ;;  %v1121_v46 = vmul.f32 0.0078125, %v1119_v45 }
 0x341   : > { %v1123_v47 = vadd.f32 1e-05, %v1121_v46 }
 0x343   : > { %1729 = vrsqrt.f32 %v1123_v47 }
 0x34c   : > { %v1728_v48 = vpop.eup %1727 }
 0x34d   : > { %v1126_v50 = vmul.f32 %v1728_v48, %v1112_v36 }
 0x34f   : > { %v1135_v52 = vmul.f32 %v1460_v49, %v1126_v50 }
 0x350   : > { %v1730_v53 = vpop.eup %1729 }
 0x351   : > { %v1144_v54 = vadd.f32 %v1461_v51, %v1135_v52  ;;  %v1127_v55 = vmul.f32 %v1730_v53, %v1113_v40 }
 0x353   : > { %v1146_v56 = vmax.f32 %v1144_v54, 0.0  ;;  %v1136_v57 = vmul.f32 %v1460_v49, %v1127_v55 }
 0x355   : > { %v1148_v58 = vadd.f32 %v1146_v56, %v990_v24  ;;  %v1145_v59 = vadd.f32 %v1461_v51, %v1136_v57 }
 0x357   : > { %1150 = vst [vmem:[#allocation2] sm:$0xff] %v1148_v58  ;;  %v1147_v60 = vmax.f32 %v1145_v59, 0.0  ;;  %1155 = sbr.rel (%p1462_p9) target bundleno = 1093 (0x445), region = 68 }
 0x359   : > { %v1149_v61 = vadd.f32 %v1147_v60, %v991_v25 }
 0x35b   : > { %1151 = vst [vmem:[#allocation2 + $0x8] sm:$0xff] %v1149_v61 }
 0x35c   : > { %v1731_v62 = vld [vmem:[%s2215_s7 + $0x38] sm:$0xff]   ;;  %v1824_v63 = vmov 0.0   ;;  %v1732_v0 = vld [vmem:[%s2215_s7 + $0x30] sm:$0xff]   ;;  %vm1825_vm1 = vmmov 0   ;;  %v1733_v1 = vld [vmem:[%s2215_s7 + $0x28] sm:$0xff]   ;;  %v1156_v7 = vpack.c.bf16 %v1149_v61, %v1148_v58 }
 0x35d   : > { %1581 = vmatprep.subr.bf16.mxu0 %v1824_v63  ;;  %1597 = vmatprep.mubr.msk.bf16.mxu0 %vm1825_vm1, %v1824_v63  ;;  %v1734_v2 = vld [vmem:[%s2215_s7 + $0x20] sm:$0xff]   ;;  %v1735_v3 = vld [vmem:[%s2215_s7 + $0x18] sm:$0xff]   ;;  %v1736_v4 = vld [vmem:[%s2215_s7 + $0x10] sm:$0xff]  }
 0x35e   : > { %1582 = vmatpush3.bf16.msra.mxu0 %v1731_v62  ;;  %v1737_v5 = vld [vmem:[%s2215_s7 + $0x8] sm:$0xff]   ;;  %v1738_v6 = vld [vmem:[%s2215_s7] sm:$0xff]  }
 0x35f   : > { %1583 = vmatprep.subr.bf16.mxu0 %v1824_v63  ;;  %v1463_v8 = vld [vmem:[%s2216_s8] ss:$0 sm:$0xff] }
 0x362   : > { %1584 = vmatpush3.bf16.msra.mxu0 %v1732_v0 }
 0x363   : > { %1585 = vmatprep.subr.bf16.mxu0 %v1824_v63 }
 0x366   : > { %1586 = vmatpush3.bf16.msra.mxu0 %v1733_v1 }
 0x367   : > { %1587 = vmatprep.subr.bf16.mxu0 %v1824_v63 }
 0x36a   : > { %1588 = vmatpush3.bf16.msra.mxu0 %v1734_v2 }
 0x36b   : > { %1589 = vmatprep.subr.bf16.mxu0 %v1824_v63 }
 0x36e   : > { %1590 = vmatpush3.bf16.msra.mxu0 %v1735_v3 }
 0x36f   : > { %1591 = vmatprep.subr.bf16.mxu0 %v1824_v63 }
 0x372   : > { %1592 = vmatpush3.bf16.msra.mxu0 %v1736_v4 }
 0x373   : > { %1593 = vmatprep.subr.bf16.mxu0 %v1824_v63 }
 0x376   : > { %1594 = vmatpush3.bf16.msra.mxu0 %v1737_v5 }
 0x377   : > { %1595 = vmatprep.subr.bf16.mxu0 %v1824_v63 }
 0x37a   : > { %1596 = vmatpush3.bf16.msra.mxu0 %v1738_v6 }
 0x37d   : > { %1598 = vmatmul.mubr.bf16.vlgmr.msra.gmra.mxu0 %v1156_v7 }
 0x43d   : > { %v1262_v9 = vpop.f32.mrf.mxu0 }
 0x43e   : > { %v1263_v10 = vadd.f32 %v1463_v8, %v1262_v9 }
 0x43f   : > { %v1599_v11 = vpop.f32.mrf.mxu0 }
 0x440   : > { %1269 = vst [vmem:[%s2217_s9] sm:$0xff] %v1263_v10 }
 0x441   : > { %v1265_v12 = vpop.f32.mrf.mxu0 }
 0x442   : > { %v1266_v13 = vadd.f32 %v1463_v8, %v1265_v12 }
 0x443   : > { %v1600_v14 = vpop.f32.mrf.mxu0 }
 0x444   : > { %1270 = vst [vmem:[%s2217_s9 + $0x8] sm:$0xff] %v1266_v13 }
 0x445 PF: > { %s22_s14 = sadd.s32 1, %s1817_s14   ;;  %s2223_s17 = sld [smem:[#allocation6_spill]] }
 0x446   : > { %p19_p10 = scmp.ge.s32.totalorder %s22_s14, 5   ;;  %s2224_s30 = smov %s1801_s10 }
 0x447   : > { %s2225_s10 = smov %s1805_s11  ;;  %s2226_s11 = smov %s1925_s21 }
 0x448   : > { %s2227_s12 = smov %s1813_s13  ;;  %21 = sbr.rel (!%p19_p10) target bundleno = 4 (0x4), region = 116 }
 0x44b   : > { %s2228_s13 = smov %s2223_s17 }
 0x44d   :  { %1293 = vsyncpa [#allocation4], 1 }
 0x44e   :  { %1295 = vsyncpa [#allocation4 + $0x1], 1 }

</bundles_post_ra>
